<compile_context>
chip_gen: v7x
topology: tpu7x:2x2x1
jax: 0.10.0
libtpu: 0.0.40
codegen_flags: <defaults>
</compile_context>

<pallas_src>
import functools

import jax
import jax.numpy as jnp
from jax import lax
from jax.experimental import pallas as pl
from jax.experimental.pallas import tpu as pltpu


def _supcon_memory_loss_kernel(q_row_ref, q_full_ref, lab_col_ref, lab_row_ref,
                               mem_logits_ref, mem_targets_ref, out_ref,
                               exp_sum_ref, pos_dot_ref, tgt_sum_ref,
                               *, temperature, block_b):
    # Read grid coordinates ONCE at the top level (never inside pl.when bodies).
    i = pl.program_id(0)
    m = pl.program_id(1)
    last_m = pl.num_programs(1) - 1
    row0 = i * block_b  # global row offset of this B tile (closed over by the when-body)

    # ---- once per B-tile: init accumulators + the in-batch (src) contrast block ----
    @pl.when(m == 0)
    def _init_and_src():
        q_row = q_row_ref[...].astype(jnp.float32)     # (Bt, D)
        q_full = q_full_ref[...].astype(jnp.float32)   # (B,  D)
        eps = jnp.float32(1e-8)
        inv_t = jnp.float32(1.0 / temperature)

        # Pre-normalize (EUP rsqrt) and fold 1/temperature into the row operand so a single
        # MXU dot yields temperature-scaled cosine similarities directly.
        inv_row = lax.rsqrt(
            jnp.maximum(jnp.sum(q_row * q_row, axis=-1, keepdims=True), eps * eps))
        inv_full = lax.rsqrt(
            jnp.maximum(jnp.sum(q_full * q_full, axis=-1, keepdims=True), eps * eps))
        qn_row = q_row * (inv_row * inv_t)
        qn_full = q_full * inv_full

        # Contract the last dims of both operands -> no explicit q.T materialization.
        src_contrast = lax.dot_general(
            qn_row, qn_full,
            dimension_numbers=(((1,), (1,)), ((), ())),
            preferred_element_type=jnp.float32)        # (Bt, B)

        src_logits = src_contrast - jnp.max(src_contrast, axis=1, keepdims=True)

        bt, b_full = src_logits.shape
        lab_eq = (lab_col_ref[...] == lab_row_ref[...]).astype(jnp.float32)   # (Bt, B)
        grow = row0 + lax.broadcasted_iota(jnp.int32, (bt, b_full), 0)
        gcol = lax.broadcasted_iota(jnp.int32, (bt, b_full), 1)
        mask = (grow != gcol).astype(jnp.float32)      # zero on the (global) diagonal
        src_targets = lab_eq * mask

        exp_sum_ref[...] = jnp.sum(jnp.exp(src_logits) * mask, axis=1, keepdims=True)
        pos_dot_ref[...] = jnp.sum(src_targets * src_logits, axis=1, keepdims=True)
        tgt_sum_ref[...] = jnp.sum(src_targets, axis=1, keepdims=True)

    # ---- every step: accumulate this memory-bank tile.  The cast to f32 happens AFTER
    #      the DMA, so the HBM stream can be bf16 / int8 (set by the caller). ----
    mem_logits = mem_logits_ref[...].astype(jnp.float32)     # (Bt, Mt)
    mem_targets = mem_targets_ref[...].astype(jnp.float32)   # (Bt, Mt)
    # TODO(synk): on v7x with compressed inputs, these axis-1 reductions could be offloaded
    # to the idle MXU via a ones-matrix dot_general if profiling shows VPU/XLU saturation.
    exp_sum_ref[...] += jnp.sum(jnp.exp(mem_logits), axis=1, keepdims=True)
    pos_dot_ref[...] += jnp.sum(mem_targets * mem_logits, axis=1, keepdims=True)
    tgt_sum_ref[...] += jnp.sum(mem_targets, axis=1, keepdims=True)

    # ---- finalize: algebraic fold of the log-softmax denominator ----
    @pl.when(m == last_m)
    def _finalize():
        log_denom = jnp.log(exp_sum_ref[...])
        # exact division: runs once per B tile, so approx reciprocal buys nothing
        out_ref[...] = log_denom - pos_dot_ref[...] / tgt_sum_ref[...]


def _largest_divisor_multiple(n, unit, cap):
    """Largest multiple-of-`unit` divisor of n that is <= cap; fall back to n (full dim)."""
    if n % unit:
        return n
    b = min(cap - cap % unit, n)
    while b >= unit:
        if n % b == 0:
            return b
        b -= unit
    return n


def _round_up(x, unit):
    return ((x + unit - 1) // unit) * unit


def _vmem_capacity_bytes():
    try:
        return int(pltpu.get_tpu_info().vmem_capacity_bytes)
    except Exception:
        return 64 * 1024 * 1024   # conservative (v7x-sized) fallback


def supcon_memory_loss(q, labels, memory_logits, memory_targets, temperature,
                       *, block_b=None, block_m=None, vmem_limit_bytes=None):
    B, D = q.shape
    Bm, M = memory_logits.shape
    assert Bm == B and memory_targets.shape == (B, M)

    vmem_cap = _vmem_capacity_bytes()
    big_vmem = vmem_cap >= 100 * 1024 * 1024        # v5e / v6e (128 MiB) vs v7x (64 MiB)

    # --- B tiling: multiple of 8 (or full B).  Keep num_b >= 2 when possible so the
    #     "parallel" B axis can shard across both TensorCores on v7x (no effect on 1-TC parts).
    if block_b is None:
        cap_b = 256
        if B >= 16 and B % 8 == 0:
            cap_b = min(cap_b, B // 2)
        block_b = _largest_divisor_multiple(B, 8, cap_b)
    if B % block_b:
        block_b = B
    num_b = B // block_b

    # --- M tiling: always lane-aligned (multiple of 128); pad M wrapper-side instead of
    #     falling back to one huge (possibly VMEM-busting) tile. ---
    ml_item = jnp.dtype(memory_logits.dtype).itemsize
    mt_item = jnp.dtype(memory_targets.dtype).itemsize
    if block_m is None:
        # Budget for the two double-buffered bank streams, sized per VMEM generation.
        bank_budget = (24 if big_vmem else 12) * 1024 * 1024
        cap_m = bank_budget // (2 * block_b * (ml_item + mt_item))
        cap_m = max(128, min(8192, (cap_m // 128) * 128))
        n_m = max(1, -(-M // cap_m)) if M > 0 else 1
        block_m = _round_up(max(1, -(-max(M, 1) // n_m)), 128)
    else:
        block_m = _round_up(int(block_m), 128)
    m_pad = _round_up(max(M, 1), block_m)
    num_m = m_pad // block_m

    if m_pad != M:
        pad = m_pad - M
        # exp(-30000) underflows to exactly 0 in f32; targets pad with 0 -> fully neutral.
        memory_logits = jnp.pad(memory_logits, ((0, 0), (0, pad)),
                                constant_values=-30000.0)
        memory_targets = jnp.pad(memory_targets, ((0, 0), (0, pad)), constant_values=0)

    labels_col = labels.reshape(B, 1).astype(jnp.int32)
    labels_row = labels.reshape(1, B).astype(jnp.int32)

    # --- explicit VMEM limit with headroom, capped by the physical capacity of this part ---
    q_item = jnp.dtype(q.dtype).itemsize
    est = 2 * block_b * block_m * (ml_item + mt_item)   # double-buffered bank tiles
    est += 2 * block_b * D * q_item                     # q rows (double buffered)
    est += 2 * B * D * q_item                           # full q (resident)
    est += 2 * (block_b + B) * 4                        # labels
    est += 2 * block_b * B * 4                          # src-contrast temporaries
    est += (3 + 2) * block_b * 4                        # scratch accumulators + output
    if vmem_limit_bytes is None:
        vmem_limit_bytes = int(est * 1.5) + (8 << 20)
        vmem_limit_bytes = max(vmem_limit_bytes, 32 << 20)
        vmem_limit_bytes = min(vmem_limit_bytes, int(vmem_cap * 0.85))

    kernel = functools.partial(_supcon_memory_loss_kernel,
                               temperature=float(temperature),
                               block_b=block_b)

    grid_spec = pltpu.PrefetchScalarGridSpec(
        num_scalar_prefetch=0,
        grid=(num_b, num_m),
        in_specs=[
            pl.BlockSpec((block_b, D), lambda i, m: (i, 0)),        # q rows for this tile
            pl.BlockSpec((B, D), lambda i, m: (0, 0)),              # full q (resident)
            pl.BlockSpec((block_b, 1), lambda i, m: (i, 0)),        # labels, column form
            pl.BlockSpec((1, B), lambda i, m: (0, 0)),              # labels, row form
            pl.BlockSpec((block_b, block_m), lambda i, m: (i, m)),  # memory logits tile
            pl.BlockSpec((block_b, block_m), lambda i, m: (i, m)),  # memory targets tile
        ],
        out_specs=pl.BlockSpec((block_b, 1), lambda i, m: (i, 0)),
        scratch_shapes=[
            pltpu.VMEM((block_b, 1), jnp.float32),  # exp-sum accumulator
            pltpu.VMEM((block_b, 1), jnp.float32),  # sum(targets * logits)
            pltpu.VMEM((block_b, 1), jnp.float32),  # sum(targets)
        ],
    )

    per_sample = pl.pallas_call(
        kernel,
        out_shape=jax.ShapeDtypeStruct((B, 1), jnp.float32),
        grid_spec=grid_spec,
        compiler_params=pltpu.CompilerParams(
            dimension_semantics=("parallel", "arbitrary"),
            vmem_limit_bytes=int(vmem_limit_bytes)),
    )(q, q, labels_col, labels_row, memory_logits, memory_targets)

    return jnp.mean(per_sample)


def _reference_loss(q, labels, memory_logits, memory_targets, temperature):
    # Pure-JAX reference mirroring the PyTorch forward.
    B = q.shape[0]
    qf = q.astype(jnp.float32)
    norms = jnp.sqrt(jnp.sum(qf * qf, axis=-1, keepdims=True))
    sims = (qf @ qf.T) / jnp.maximum(norms * norms.T, 1e-8)
    contrast = sims / temperature
    logits = contrast - jnp.max(contrast, axis=1, keepdims=True)
    eq = (labels[None, :] == labels[:, None]).astype(jnp.float32)
    mask = 1.0 - jnp.eye(B, dtype=jnp.float32)
    src_targets = eq * mask
    mem_logits = memory_logits.astype(jnp.float32)
    mem_targets = memory_targets.astype(jnp.float32)
    targets = jnp.concatenate([src_targets, mem_targets], axis=1)
    all_logits = jnp.concatenate([logits, mem_logits], axis=1)
    exp_logits = jnp.concatenate([jnp.exp(logits) * mask, jnp.exp(mem_logits)], axis=1)
    log_prob = all_logits - jnp.log(jnp.sum(exp_logits, axis=1, keepdims=True))
    mean_log_prob_pos = jnp.sum(targets * log_prob, axis=1) / jnp.sum(targets, axis=1)
    return jnp.mean(-mean_log_prob_pos)


if __name__ == "__main__":
    B, D, M = 16, 32, 500          # M deliberately NOT a multiple of 128 -> exercises padding
    temperature = 0.07

    key = jax.random.PRNGKey(0)
    kq, kl, kml, kmt = jax.random.split(key, 4)

    q = jax.random.normal(kq, (B, D), dtype=jnp.float32)
    labels = jax.random.randint(kl, (B,), 0, 4, dtype=jnp.int32)
    # Compressed memory bank: bf16 logits + int8 targets (kernel casts to f32 after the DMA).
    memory_logits = (jax.random.normal(kml, (B, M), dtype=jnp.float32) * 0.5
                     ).astype(jnp.bfloat16)
    memory_targets = jax.random.bernoulli(kmt, 0.3, (B, M)).astype(jnp.int8)
    # guarantee at least one positive per row (matches typical usage; avoids div-by-zero)
    memory_targets = memory_targets.at[:, 0].set(1)

    # block_b=8 / block_m=128 -> (parallel B) x (arbitrary M) 2x4 grid with a padded tail tile.
    loss = supcon_memory_loss(q, labels, memory_logits, memory_targets, temperature,
                              block_b=8, block_m=128)
    jax.block_until_ready(loss)

    ref = _reference_loss(q, labels, memory_logits, memory_targets, temperature)
    assert jnp.isfinite(loss), "loss is not finite"
    assert jnp.allclose(loss, ref, rtol=1e-3, atol=1e-3), (loss, ref)

    print("KERNEL_OK")
</pallas_src>

<mosaic_0001>
module attributes {stable_mosaic.version = 11 : i64} {
  func.func @_supcon_memory_loss_kernel(%arg0: i32, %arg1: i32, %arg2: memref<8x32xf32, #tpu.memory_space<vmem>>, %arg3: memref<16x32xf32, #tpu.memory_space<vmem>>, %arg4: memref<8x1xi32, #tpu.memory_space<vmem>>, %arg5: memref<1x16xi32, #tpu.memory_space<vmem>>, %arg6: memref<8x128xbf16, #tpu.memory_space<vmem>>, %arg7: memref<8x128xi8, #tpu.memory_space<vmem>>, %arg8: memref<8x1xf32, #tpu.memory_space<vmem>>, %arg9: memref<8x1xf32, #tpu.memory_space<vmem>>, %arg10: memref<8x1xf32, #tpu.memory_space<vmem>>, %arg11: memref<8x1xf32, #tpu.memory_space<vmem>>) attributes {dimension_semantics = [#tpu.dimension_semantics<parallel>, #tpu.dimension_semantics<arbitrary>], iteration_bounds = array<i64: 2, 4>, scalar_prefetch = 0 : i64, scratch_operands = 3 : i64, tpu.core_type = #tpu.core_type<tc>, window_params = [{transform_indices = @transform_0, window_bounds = array<i64: 8, 32>}, {pipeline_mode = #tpu.pipeline_mode<synchronous>, transform_indices = @transform_1, window_bounds = array<i64: 16, 32>}, {transform_indices = @transform_2, window_bounds = array<i64: 8, 1>}, {pipeline_mode = #tpu.pipeline_mode<synchronous>, transform_indices = @transform_3, window_bounds = array<i64: 1, 16>}, {transform_indices = @transform_4, window_bounds = array<i64: 8, 128>}, {transform_indices = @transform_5, window_bounds = array<i64: 8, 128>}, {transform_indices = @transform_6, window_bounds = array<i64: 8, 1>}]} {
    %c8_i32 = arith.constant 8 : i32
    %0 = arith.muli %arg0, %c8_i32 : i32
    %c0_i32 = arith.constant 0 : i32
    %1 = arith.cmpi eq, %arg1, %c0_i32 : i32
    %2 = arith.extui %1 : i1 to i32
    %c0_i32_0 = arith.constant 0 : i32
    %3 = arith.cmpi ne, %2, %c0_i32_0 : i32
    scf.if %3 {
      %c0_19 = arith.constant 0 : index
      %c0_20 = arith.constant 0 : index
      %28 = vector.load %arg2[%c0_19, %c0_20] : memref<8x32xf32, #tpu.memory_space<vmem>>, vector<8x32xf32>
      %c0_21 = arith.constant 0 : index
      %c0_22 = arith.constant 0 : index
      %29 = vector.load %arg3[%c0_21, %c0_22] : memref<16x32xf32, #tpu.memory_space<vmem>>, vector<16x32xf32>
      %30 = arith.mulf %28, %28 : vector<8x32xf32>
      %cst_23 = arith.constant dense<0.000000e+00> : vector<8xf32>
      %31 = vector.multi_reduction <add>, %30, %cst_23 [1] : vector<8x32xf32> to vector<8xf32>
      %32 = vector.shape_cast %31 : vector<8xf32> to vector<8x1xf32>
      %cst_24 = arith.constant 9.99999993E-9 : f32
      %cst_25 = arith.constant 9.99999993E-9 : f32
      %33 = arith.mulf %cst_24, %cst_25 : f32
      %34 = vector.broadcast %33 : f32 to vector<8x1xf32>
      %35 = arith.maximumf %32, %34 : vector<8x1xf32>
      %36 = math.rsqrt %35 : vector<8x1xf32>
      %37 = arith.mulf %29, %29 : vector<16x32xf32>
      %cst_26 = arith.constant dense<0.000000e+00> : vector<16xf32>
      %38 = vector.multi_reduction <add>, %37, %cst_26 [1] : vector<16x32xf32> to vector<16xf32>
      %39 = vector.shape_cast %38 : vector<16xf32> to vector<16x1xf32>
      %cst_27 = arith.constant 9.99999993E-9 : f32
      %cst_28 = arith.constant 9.99999993E-9 : f32
      %40 = arith.mulf %cst_27, %cst_28 : f32
      %41 = vector.broadcast %40 : f32 to vector<16x1xf32>
      %42 = arith.maximumf %39, %41 : vector<16x1xf32>
      %43 = math.rsqrt %42 : vector<16x1xf32>
      %cst_29 = arith.constant 14.2857141 : f32
      %44 = vector.broadcast %cst_29 : f32 to vector<8x1xf32>
      %45 = arith.mulf %36, %44 : vector<8x1xf32>
      %46 = vector.broadcast %45 : vector<8x1xf32> to vector<8x32xf32>
      %47 = arith.mulf %28, %46 : vector<8x32xf32>
      %48 = vector.broadcast %43 : vector<16x1xf32> to vector<16x32xf32>
      %49 = arith.mulf %29, %48 : vector<16x32xf32>
      %cst_30 = arith.constant dense<0.000000e+00> : vector<8x16xf32>
      %50 = tpu.matmul %47, %49, %cst_30 {dimension_numbers = #tpu.dot_dimension_numbers<[1], [1], [0], [0], [0, 0, 1, 0], [], []>} : vector<8x32xf32>, vector<16x32xf32>, vector<8x16xf32> -> vector<8x16xf32>
      %cst_31 = arith.constant dense<0xFF800000> : vector<8xf32>
      %51 = vector.multi_reduction <maximumf>, %50, %cst_31 [1] : vector<8x16xf32> to vector<8xf32>
      %52 = vector.shape_cast %51 : vector<8xf32> to vector<8x1xf32>
      %53 = vector.broadcast %52 : vector<8x1xf32> to vector<8x16xf32>
      %54 = arith.subf %50, %53 : vector<8x16xf32>
      %c0_32 = arith.constant 0 : index
      %c0_33 = arith.constant 0 : index
      %55 = vector.load %arg4[%c0_32, %c0_33] : memref<8x1xi32, #tpu.memory_space<vmem>>, vector<8x1xi32>
      %c0_34 = arith.constant 0 : index
      %c0_35 = arith.constant 0 : index
      %56 = vector.load %arg5[%c0_34, %c0_35] : memref<1x16xi32, #tpu.memory_space<vmem>>, vector<1x16xi32>
      %57 = vector.broadcast %55 : vector<8x1xi32> to vector<8x16xi32>
      %58 = vector.broadcast %56 : vector<1x16xi32> to vector<8x16xi32>
      %59 = arith.cmpi eq, %57, %58 : vector<8x16xi32>
      %60 = arith.extui %59 : vector<8x16xi1> to vector<8x16xi32>
      %61 = arith.sitofp %60 : vector<8x16xi32> to vector<8x16xf32>
      %62 = tpu.iota {dimensions = array<i32: 0>} : vector<8x16xi32>
      %63 = vector.broadcast %0 : i32 to vector<8x16xi32>
      %64 = arith.addi %63, %62 : vector<8x16xi32>
      %65 = tpu.iota {dimensions = array<i32: 1>} : vector<8x16xi32>
      %66 = arith.cmpi ne, %64, %65 : vector<8x16xi32>
      %67 = arith.extui %66 : vector<8x16xi1> to vector<8x16xi32>
      %68 = arith.sitofp %67 : vector<8x16xi32> to vector<8x16xf32>
      %69 = arith.mulf %61, %68 : vector<8x16xf32>
      %70 = math.exp %54 : vector<8x16xf32>
      %71 = arith.mulf %70, %68 : vector<8x16xf32>
      %cst_36 = arith.constant dense<0.000000e+00> : vector<8xf32>
      %72 = vector.multi_reduction <add>, %71, %cst_36 [1] : vector<8x16xf32> to vector<8xf32>
      %73 = vector.shape_cast %72 : vector<8xf32> to vector<8x1xf32>
      %c0_37 = arith.constant 0 : index
      %c0_38 = arith.constant 0 : index
      %74 = vector.load %arg9[%c0_37, %c0_38] : memref<8x1xf32, #tpu.memory_space<vmem>>, vector<8x1xf32>
      tpu.vector_store %arg9[%c0_37, %c0_38], %73 {strides = array<i32>} : memref<8x1xf32, #tpu.memory_space<vmem>>, vector<8x1xf32>,
      %75 = arith.mulf %69, %54 : vector<8x16xf32>
      %cst_39 = arith.constant dense<0.000000e+00> : vector<8xf32>
      %76 = vector.multi_reduction <add>, %75, %cst_39 [1] : vector<8x16xf32> to vector<8xf32>
      %77 = vector.shape_cast %76 : vector<8xf32> to vector<8x1xf32>
      %c0_40 = arith.constant 0 : index
      %c0_41 = arith.constant 0 : index
      %78 = vector.load %arg10[%c0_40, %c0_41] : memref<8x1xf32, #tpu.memory_space<vmem>>, vector<8x1xf32>
      tpu.vector_store %arg10[%c0_40, %c0_41], %77 {strides = array<i32>} : memref<8x1xf32, #tpu.memory_space<vmem>>, vector<8x1xf32>,
      %cst_42 = arith.constant dense<0.000000e+00> : vector<8xf32>
      %79 = vector.multi_reduction <add>, %69, %cst_42 [1] : vector<8x16xf32> to vector<8xf32>
      %80 = vector.shape_cast %79 : vector<8xf32> to vector<8x1xf32>
      %c0_43 = arith.constant 0 : index
      %c0_44 = arith.constant 0 : index
      %81 = vector.load %arg11[%c0_43, %c0_44] : memref<8x1xf32, #tpu.memory_space<vmem>>, vector<8x1xf32>
      tpu.vector_store %arg11[%c0_43, %c0_44], %80 {strides = array<i32>} : memref<8x1xf32, #tpu.memory_space<vmem>>, vector<8x1xf32>,
    } else {
    }
    %c0 = arith.constant 0 : index
    %c0_1 = arith.constant 0 : index
    %4 = vector.load %arg6[%c0, %c0_1] : memref<8x128xbf16, #tpu.memory_space<vmem>>, vector<8x128xbf16>
    %5 = arith.extf %4 : vector<8x128xbf16> to vector<8x128xf32>
    %c0_2 = arith.constant 0 : index
    %c0_3 = arith.constant 0 : index
    %6 = vector.load %arg7[%c0_2, %c0_3] : memref<8x128xi8, #tpu.memory_space<vmem>>, vector<8x128xi8>
    %7 = arith.sitofp %6 : vector<8x128xi8> to vector<8x128xf32>
    %c0_4 = arith.constant 0 : index
    %c0_5 = arith.constant 0 : index
    %8 = vector.load %arg9[%c0_4, %c0_5] : memref<8x1xf32, #tpu.memory_space<vmem>>, vector<8x1xf32>
    %9 = math.exp %5 : vector<8x128xf32>
    %cst = arith.constant dense<0.000000e+00> : vector<8xf32>
    %10 = vector.multi_reduction <add>, %9, %cst [1] : vector<8x128xf32> to vector<8xf32>
    %11 = vector.shape_cast %10 : vector<8xf32> to vector<8x1xf32>
    %12 = arith.addf %8, %11 : vector<8x1xf32>
    %c0_6 = arith.constant 0 : index
    %c0_7 = arith.constant 0 : index
    %13 = vector.load %arg9[%c0_6, %c0_7] : memref<8x1xf32, #tpu.memory_space<vmem>>, vector<8x1xf32>
    tpu.vector_store %arg9[%c0_6, %c0_7], %12 {strides = array<i32>} : memref<8x1xf32, #tpu.memory_space<vmem>>, vector<8x1xf32>,
    %c0_8 = arith.constant 0 : index
    %c0_9 = arith.constant 0 : index
    %14 = vector.load %arg10[%c0_8, %c0_9] : memref<8x1xf32, #tpu.memory_space<vmem>>, vector<8x1xf32>
    %15 = arith.mulf %7, %5 : vector<8x128xf32>
    %cst_10 = arith.constant dense<0.000000e+00> : vector<8xf32>
    %16 = vector.multi_reduction <add>, %15, %cst_10 [1] : vector<8x128xf32> to vector<8xf32>
    %17 = vector.shape_cast %16 : vector<8xf32> to vector<8x1xf32>
    %18 = arith.addf %14, %17 : vector<8x1xf32>
    %c0_11 = arith.constant 0 : index
    %c0_12 = arith.constant 0 : index
    %19 = vector.load %arg10[%c0_11, %c0_12] : memref<8x1xf32, #tpu.memory_space<vmem>>, vector<8x1xf32>
    tpu.vector_store %arg10[%c0_11, %c0_12], %18 {strides = array<i32>} : memref<8x1xf32, #tpu.memory_space<vmem>>, vector<8x1xf32>,
    %c0_13 = arith.constant 0 : index
    %c0_14 = arith.constant 0 : index
    %20 = vector.load %arg11[%c0_13, %c0_14] : memref<8x1xf32, #tpu.memory_space<vmem>>, vector<8x1xf32>
    %cst_15 = arith.constant dense<0.000000e+00> : vector<8xf32>
    %21 = vector.multi_reduction <add>, %7, %cst_15 [1] : vector<8x128xf32> to vector<8xf32>
    %22 = vector.shape_cast %21 : vector<8xf32> to vector<8x1xf32>
    %23 = arith.addf %20, %22 : vector<8x1xf32>
    %c0_16 = arith.constant 0 : index
    %c0_17 = arith.constant 0 : index
    %24 = vector.load %arg11[%c0_16, %c0_17] : memref<8x1xf32, #tpu.memory_space<vmem>>, vector<8x1xf32>
    tpu.vector_store %arg11[%c0_16, %c0_17], %23 {strides = array<i32>} : memref<8x1xf32, #tpu.memory_space<vmem>>, vector<8x1xf32>,
    %c3_i32 = arith.constant 3 : i32
    %25 = arith.cmpi eq, %arg1, %c3_i32 : i32
    %26 = arith.extui %25 : i1 to i32
    %c0_i32_18 = arith.constant 0 : i32
    %27 = arith.cmpi ne, %26, %c0_i32_18 : i32
    scf.if %27 {
      %c0_19 = arith.constant 0 : index
      %c0_20 = arith.constant 0 : index
      %28 = vector.load %arg9[%c0_19, %c0_20] : memref<8x1xf32, #tpu.memory_space<vmem>>, vector<8x1xf32>
      %29 = math.log %28 : vector<8x1xf32>
      %c0_21 = arith.constant 0 : index
      %c0_22 = arith.constant 0 : index
      %30 = vector.load %arg10[%c0_21, %c0_22] : memref<8x1xf32, #tpu.memory_space<vmem>>, vector<8x1xf32>
      %c0_23 = arith.constant 0 : index
      %c0_24 = arith.constant 0 : index
      %31 = vector.load %arg11[%c0_23, %c0_24] : memref<8x1xf32, #tpu.memory_space<vmem>>, vector<8x1xf32>
      %32 = arith.divf %30, %31 : vector<8x1xf32>
      %33 = arith.subf %29, %32 : vector<8x1xf32>
      %c0_25 = arith.constant 0 : index
      %c0_26 = arith.constant 0 : index
      %34 = vector.load %arg8[%c0_25, %c0_26] : memref<8x1xf32, #tpu.memory_space<vmem>>, vector<8x1xf32>
      tpu.vector_store %arg8[%c0_25, %c0_26], %33 {strides = array<i32>} : memref<8x1xf32, #tpu.memory_space<vmem>>, vector<8x1xf32>,
    } else {
    }
    return
  }
  func.func @transform_0(%arg0: i32, %arg1: i32) -> (i32, i32) {
    %c0_i32 = arith.constant 0 : i32
    %c0_i32_0 = arith.constant 0 : i32
    return %arg0, %c0_i32 : i32, i32
  }
  func.func @transform_1(%arg0: i32, %arg1: i32) -> (i32, i32) {
    %c0_i32 = arith.constant 0 : i32
    %c0_i32_0 = arith.constant 0 : i32
    %c0_i32_1 = arith.constant 0 : i32
    return %c0_i32, %c0_i32_0 : i32, i32
  }
  func.func @transform_2(%arg0: i32, %arg1: i32) -> (i32, i32) {
    %c0_i32 = arith.constant 0 : i32
    %c0_i32_0 = arith.constant 0 : i32
    return %arg0, %c0_i32 : i32, i32
  }
  func.func @transform_3(%arg0: i32, %arg1: i32) -> (i32, i32) {
    %c0_i32 = arith.constant 0 : i32
    %c0_i32_0 = arith.constant 0 : i32
    %c0_i32_1 = arith.constant 0 : i32
    return %c0_i32, %c0_i32_0 : i32, i32
  }
  func.func @transform_4(%arg0: i32, %arg1: i32) -> (i32, i32) {
    %c0_i32 = arith.constant 0 : i32
    return %arg0, %arg1 : i32, i32
  }
  func.func @transform_5(%arg0: i32, %arg1: i32) -> (i32, i32) {
    %c0_i32 = arith.constant 0 : i32
    return %arg0, %arg1 : i32, i32
  }
  func.func @transform_6(%arg0: i32, %arg1: i32) -> (i32, i32) {
    %c0_i32 = arith.constant 0 : i32
    %c0_i32_0 = arith.constant 0 : i32
    return %arg0, %c0_i32 : i32, i32
  }
}

</mosaic_0001>

<bundles_post_ra>
// kernel: tpu_custom_call.1
= control target key start
LH: loop header
LB: loop body
LE: loop exit
PB: predicated region body
PF: predicated region fallthrough
CT: control target
= control target key end

     0   :  { %s1540_s0 = inlined_call_operand.hbm [shape: f32[16,32], index: 0, kind: input, shape index: {}]   ;;  %s1541_s1 = inlined_call_operand.hbm [shape: f32[16,32], index: 1, kind: input, shape index: {}]   ;;  %s1542_s2 = inlined_call_operand.vmem [shape: s32[16,1], index: 2, kind: input, shape index: {}]   ;;  %s1543_s3 = inlined_call_operand.hbm [shape: s32[1,16], index: 3, kind: input, shape index: {}]   ;;  %s1544_s4 = inlined_call_operand.vmem [shape: bf16[16,512], index: 4, kind: input, shape index: {}]   ;;  %s1545_s5 = inlined_call_operand.hbm [shape: s8[16,512], index: 5, kind: input, shape index: {}]   ;;  %s1546_s6 = inlined_call_operand.vmem [shape: f32[16,1], index: 6, kind: output, shape index: {}]  }
   0x1   :  { %1557 = sst [smem:[#allocation18_spill]] %s1540_s0 }
   0x2   :  { %1558 = sst [smem:[#allocation19_spill]] %s1541_s1 }
   0x3   :  { %1559 = sst [smem:[#allocation20_spill]] %s1542_s2 }
   0x4   :  { %1560 = sst [smem:[#allocation21_spill]] %s1543_s3 }
   0x5   :  { %1561 = sst [smem:[#allocation22_spill]] %s1544_s4 }
   0x6   :  { %1562 = sst [smem:[#allocation23_spill]] %s1545_s5 }
   0x7   :  { %1563 = sst [smem:[#allocation24_spill]] %s1546_s6 }
   0x8   :  { %11 = vsyncpa [#allocation6], 0 }
   0x9   :  { %13 = vsyncpa [#allocation6 + $0x1], 0 }
   0xa   :  { %14 = vsyncpa [#allocation8], 0 }
   0xb   :  { %15 = vsyncpa [#allocation11], 0 }
   0xc   :  { %17 = vsyncpa [#allocation11 + $0x1], 0  ;;  %s1184_s21 = smov 0   ;;  %s1186_s22 = smov 0  }
   0xd   :  { %s1188_s23 = smov 0   ;;  %s1190_s24 = smov 0  }
   0xe   :  { %s1192_s25 = smov 0   ;;  %s1194_s26 = smov 0  }
   0xf   :  { %s1196_s27 = smov 0   ;;  %s1198_s28 = smov 0  }
  0x10   :  { %s1200_s29 = smov 0   ;;  %s1202_s30 = smov 0  }
  0x11   :  { %s1204_s7 = smov 0  }
  0x12 LB: > { %1564 = sst [smem:[#allocation15_spill]] %s1121_s27  ;;  %s736_s8 = sadd.s32 4294967295, %s1137_s7   ;;  %s1137_s7 = sphi %s1204_s7, %s23_s7   ;;  %s1133_s30 = sphi %s1202_s30, %s1606_s30   ;;  %s1129_s29 = sphi %s1200_s29, %s1605_s29   ;;  %s1125_s28 = sphi %s1198_s28, %s1604_s28   ;;  %s1121_s27 = sphi %s1196_s27, %s1603_s27   ;;  %s1117_s26 = sphi %s1194_s26, %s1602_s26   ;;  %s1113_s25 = sphi %s1192_s25, %s1601_s25   ;;  %s1109_s24 = sphi %s1190_s24, %s1600_s24   ;;  %s1105_s23 = sphi %s1188_s23, %s1599_s23   ;;  %s1101_s22 = sphi %s1186_s22, %s1598_s22   ;;  %s1097_s21 = sphi %s1184_s21, %s1597_s21  }
  0x13   : > { %1565 = sst [smem:[#allocation16_spill]] %s1125_s28  ;;  %p738_p0 = scmp.ge.s32.totalorder %s1137_s7, 1 }
  0x14   : > { %p1241_p1 = scmp.eq.s32.totalorder %s736_s8, 0  ;;  %p216_p2 = scmp.lt.s32.totalorder %s1137_s7, 9 }
  0x15   : > { %s1139_s11 = smov [#allocation7]   ;;  %s1140_s14 = smov [#allocation9]  }
  0x16   : > { %s1566_s9 = scalar_select %p1241_p1, 1, 0 }
  0x17   : > { %p1246_p3 = pnand %p738_p0, %p216_p2  ;;  %s228_s12 = sshll.u32 %s1139_s11, 4  ;;  %s229_s12 = int_to_ptr.vmem [resolvable:$true] %s228_s12 }
  0x18   : > { %s242_s15 = sshll.u32 %s1140_s14, 4  ;;  %s1569_s1 = sld [smem:[#allocation19_spill]]  ;;  %s1258_s15 = int_to_ptr.vmem [resolvable:$true] %s242_s15 }
  0x19   : > { %s1567_s10 = scalar_select %p1246_p3, 1, 0 }
  0x1a   : > { %p793_p4 = pneg %p1246_p3 }
  0x1c   : > { %p1254_p5 = pnand %p793_p4, %p1241_p1 }
  0x1e   : > { %s923_s18 = scalar_lea.hbm %s1569_s1, 256  ;;  %p925_p7 = pneg %p1254_p5 }
  0x1f   : > { %p924_p6 = scmp.ne.s32.totalorder %s1569_s1, %s923_s18  ;;  %p930_p10 = scmp.lt.u32.totalorder %s923_s18, %s1569_s1 }
  0x21   : > { %p926_p8 = pnand %p925_p7, %p924_p6 }
  0x23   : > { %p927_p9 = pneg %p926_p8 }
  0x25   : > { %p932_p11 = pnand %p930_p10, %p927_p9 }
  0x27   : > { %935 = shalt.err (!%p932_p11)
}
  0x28   : > { %s936_s14 = scalar_lea.vmem %s229_s12, 256  ;;  %p944_p2 = scmp.lt.s32.totalorder %s229_s12, %s229_s12 }
  0x29   : > { %p937_p12 = scmp.ne.s32.totalorder %s229_s12, %s936_s14  ;;  %p945_p4 = scmp.lt.s32.totalorder %s936_s14, %s936_s14 }
  0x2b   : > { %p939_p13 = pnand %p937_p12, %p925_p7  ;;  %p946_p3 = por %p945_p4, %p944_p2 }
  0x2d   : > { %p940_p0 = pneg %p939_p13 }
  0x2f   : > { %p947_p1 = pnand %p946_p3, %p940_p0 }
  0x31   : > { %950 = shalt.err (!%p947_p1)
}
  0x32   : > { %s1141_s16 = smov 128   ;;  %s1142_s17 = smov 8  }
  0x33   : > { %796 = dma.hbm_to_vmem [thread:$0]  (!%p1254_p5), %s1569_s1, 256, %s229_s12, [#allocation8], %s1141_s16, %s1141_s16, %s1142_s17  }
  0x34   : > { %s1570_s3 = sld [smem:[#allocation21_spill]] }
  0x3a   : > { %s951_s11 = scalar_lea.hbm %s1570_s3, 16 }
  0x3b   : > { %p952_p6 = scmp.ne.s32.totalorder %s1570_s3, %s951_s11  ;;  %p958_p8 = scmp.lt.u32.totalorder %s951_s11, %s1570_s3 }
  0x3d   : > { %p954_p1 = pnand %p952_p6, %p925_p7 }
  0x3f   : > { %p955_p3 = pneg %p954_p1 }
  0x41   : > { %p960_p9 = pnand %p958_p8, %p955_p3 }
  0x43   : > { %963 = shalt.err (!%p960_p9)
}
  0x44   : > { %s964_s12 = scalar_lea.vmem %s1258_s15, 16  ;;  %s971_s4 = scalar_lea.vmem %s1258_s15, 32 }
  0x45   : > { %p965_p10 = scmp.ne.s32.totalorder %s1258_s15, %s964_s12  ;;  %p972_p13 = scmp.lt.s32.totalorder %s1258_s15, %s1258_s15 }
  0x46   : > { %p973_p0 = scmp.lt.s32.totalorder %s971_s4, %s964_s12 }
  0x47   : > { %p967_p11 = pnand %p965_p10, %p925_p7 }
  0x48   : > { %p974_p2 = por %p973_p0, %p972_p13 }
  0x49   : > { %p968_p12 = pneg %p967_p11 }
  0x4b   : > { %p975_p4 = pnand %p974_p2, %p968_p12 }
  0x4d   : > { %978 = shalt.err (!%p975_p4)
}
  0x4e   : > { %799 = dma.hbm_to_vmem [thread:$0]  (!%p1254_p5), %s1570_s3, 16, %s1258_s15, [#allocation8]  }
  0x4f   : > { %s42_s16 = sadd.s32 1, %s1117_s26  ;;  %p49_p7 = scmp.ne.s32.totalorder %s1117_s26, %s1113_s25 }
  0x50   : > { %p1552_p6 = scmp.eq.s32.totalorder %s1137_s7, 0  ;;  %p55_p1 = scmp.ne.s32.totalorder %s1113_s25, %s1109_s24 }
  0x51   : > { %p1551_p3 = scmp.lt.s32.totalorder %s1137_s7, 8  ;;  %s253_s13 = sand.u32 1, %s1117_s26  }
  0x52   : > { %p51_p8 = por %p1552_p6, %p49_p7  ;;  %p1571_p9 = scmp.ne.s32.totalorder %s1566_s9, 0 }
  0x53   : > { %s742_s18 = sshll.u32 %s253_s13, 3  ;;  %s743_s19 = sshll.u32 %s1133_s30, 7 }
  0x54   : > { %p1320_p10 = por %p1571_p9, %p55_p1  ;;  %s1573_s0 = sld [smem:[#allocation18_spill]] }
  0x55   : > { %s257_s24 = scalar_lea.vmem [#allocation5], %s742_s18  ;;  %p1334_p5 = pnand %p1551_p3, %p51_p8 }
  0x56   : > { %s1572_s17 = scalar_select %p1320_p10, 1, 0 }
  0x57   : > { %s264_s15 = sshll.u32 %s257_s24, 4  ;;  %s254_s12 = scalar_lea.sflag [#allocation6], %s253_s13  ;;  %s1330_s15 = int_to_ptr.vmem [resolvable:$true] %s264_s15 }
  0x58   : > { %p981_p12 = pneg %p1334_p5 }
  0x5a   : > { %s1328_s11 = scalar_lea.hbm %s1573_s0, %s743_s19  ;;  %s984_s18 = scalar_lea.hbm %s1573_s0, 256 }
  0x5b   : > { %s979_s4 = scalar_lea.hbm %s1328_s11, 128  ;;  %p985_p2 = scmp.lt.u32.totalorder %s1328_s11, %s1573_s0 }
  0x5c   : > { %p980_p11 = scmp.ne.s32.totalorder %s1328_s11, %s979_s4  ;;  %p986_p4 = scmp.lt.u32.totalorder %s984_s18, %s979_s4 }
  0x5d   : > { %p988_p1 = scmp.lt.u32.totalorder %s979_s4, %s1328_s11 }
  0x5e   : > { %p982_p13 = pnand %p981_p12, %p980_p11  ;;  %p987_p7 = por %p986_p4, %p985_p2 }
  0x60   : > { %p983_p0 = pneg %p982_p13  ;;  %p989_p8 = por %p988_p1, %p987_p7 }
  0x62   : > { %p990_p3 = pnand %p989_p8, %p983_p0 }
  0x64   : > { %993 = shalt.err (!%p990_p3)
}
  0x65   : > { %s994_s13 = scalar_lea.vmem %s1330_s15, 128  ;;  %s1143_s8 = smov [#allocation5]  }
  0x66   : > { %p995_p11 = scmp.ne.s32.totalorder %s1330_s15, %s994_s13  ;;  %s999_s24 = sshll.u32 %s1143_s8, 4  ;;  %s1000_s24 = int_to_ptr.vmem [resolvable:$false] %s999_s24 }
  0x67   : > { %s1001_s2 = scalar_lea.vmem %s1000_s24, 256  ;;  %p1002_p10 = scmp.lt.s32.totalorder %s1330_s15, %s1000_s24 }
  0x68   : > { %p997_p13 = pnand %p995_p11, %p981_p12  ;;  %p1003_p2 = scmp.lt.s32.totalorder %s1001_s2, %s994_s13 }
  0x6a   : > { %p998_p6 = pneg %p997_p13  ;;  %p1004_p4 = por %p1003_p2, %p1002_p10 }
  0x6c   : > { %p1005_p7 = pnand %p1004_p4, %p998_p6 }
  0x6e   : > { %1008 = shalt.err (!%p1005_p7)
}
  0x6f   : > { %803 = dma.hbm_to_vmem [thread:$0]  (!%p1334_p5), %s1328_s11, 128, %s1330_s15, %s254_s12  }
  0x70   : > { %s32_s4 = sadd.s32 1, %s1129_s29  ;;  %s35_s14 = sadd.s32 1, %s1133_s30 }
  0x71   : > { %p33_p6 = scmp.ge.s32.totalorder %s32_s4, 4  ;;  %s166_s6 = sadd.s32 1, %s1105_s23 }
  0x72   : > { %p173_p3 = scmp.ne.s32.totalorder %s1105_s23, %s1101_s22  ;;  %p1576_p10 = scmp.eq.s32.totalorder %s1137_s7, 0 }
  0x73   : > { %s1608_s4 = smov (%p33_p6, %s32_s4), 0  ;;  %s1610_s14 = smov (!%p33_p6, %s35_s14), %s1133_s30 }
  0x74   : > { %1575 = sst [smem:[#allocation17_spill]] %s1608_s4  ;;  %s162_s18 = ssub.s32 %s1129_s29, %s1608_s4 }
  0x75   : > { %p1375_p12 = por %p173_p3, %p1576_p10  ;;  %p37_p5 = scmp.ge.s32.totalorder %s1610_s14, 2 }
  0x76   : > { %p179_p0 = scmp.ne.s32.totalorder %s1101_s22, %s1097_s21  ;;  %s289_s11 = sand.u32 1, %s1105_s23  }
  0x77   : > { %s745_s15 = sshll.u32 %s1133_s30, 2  ;;  %s1612_s14 = smov (%p37_p5, %s1610_s14), 0 }
  0x78   : > { %p1387_p1 = por %p179_p0, %p1571_p9  ;;  %s39_s20 = ssub.s32 %s1133_s30, %s1612_s14 }
  0x79   : > { %s744_s13 = sshll.u32 %s289_s11, 1  ;;  %p40_p8 = scmp.eq.s32.totalorder %s39_s20, 0 }
  0x7a   : > { %s163_s8 = sor.u32 %s162_s18, %s39_s20  ;;  %s298_s2 = sadd.s32 %s1129_s29, %s745_s15 }
  0x7b   : > { %p164_p11 = scmp.eq.s32.totalorder %s163_s8, 0  ;;  %s293_s0 = scalar_lea.vmem [#allocation10], %s744_s13 }
  0x7c   : > { %s1396_s24 = scalar_select %p40_p8, %s1117_s26, %s42_s16  }
  0x7d   : > { %s1399_s21 = scalar_select %p164_p11, %s1105_s23, %s166_s6  }
  0x7e   : > { %s302_s1 = sshll.u32 %s293_s0, 4  ;;  %s746_s3 = sshll.u32 %s298_s2, 5  ;;  %s1402_s1 = int_to_ptr.vmem [resolvable:$true] %s302_s1 }
  0x7f   : > { %s1579_s5 = sld [smem:[#allocation23_spill]]  ;;  %p1580_p9 = scmp.lt.s32.totalorder %s1137_s7, 8 }
  0x80   : > { %s290_s0 = scalar_lea.sflag [#allocation11], %s289_s11 }
  0x81   : > { %p1413_p13 = pnand %p1580_p9, %p1375_p12 }
  0x83   : > { %p1011_p4 = pneg %p1413_p13 }
  0x85   : > { %s1407_s28 = scalar_lea.hbm %s1579_s5, %s746_s3  ;;  %s1014_s4 = scalar_lea.hbm %s1579_s5, 256 }
  0x86   : > { %s1009_s6 = scalar_lea.hbm %s1407_s28, 32  ;;  %p1015_p3 = scmp.lt.u32.totalorder %s1407_s28, %s1579_s5 }
  0x87   : > { %p1010_p2 = scmp.ne.s32.totalorder %s1407_s28, %s1009_s6  ;;  %p1016_p10 = scmp.lt.u32.totalorder %s1014_s4, %s1009_s6 }
  0x88   : > { %p1018_p5 = scmp.lt.u32.totalorder %s1009_s6, %s1407_s28 }
  0x89   : > { %p1012_p7 = pnand %p1011_p4, %p1010_p2  ;;  %p1017_p12 = por %p1016_p10, %p1015_p3 }
  0x8b   : > { %p1013_p6 = pneg %p1012_p7  ;;  %p1019_p0 = por %p1018_p5, %p1017_p12 }
  0x8d   : > { %p1020_p8 = pnand %p1019_p0, %p1013_p6 }
  0x8f   : > { %1023 = shalt.err (!%p1020_p8)
}
  0x90   : > { %s1024_s11 = scalar_lea.vmem %s1402_s1, 32  ;;  %s1144_s15 = smov [#allocation10]  }
  0x91   : > { %p1025_p11 = scmp.ne.s32.totalorder %s1402_s1, %s1024_s11  ;;  %s1029_s20 = sshll.u32 %s1144_s15, 4  ;;  %s1030_s20 = int_to_ptr.vmem [resolvable:$false] %s1029_s20 }
  0x92   : > { %s1031_s13 = scalar_lea.vmem %s1030_s20, 64  ;;  %p1032_p7 = scmp.lt.s32.totalorder %s1402_s1, %s1030_s20 }
  0x93   : > { %p1027_p9 = pnand %p1025_p11, %p1011_p4  ;;  %p1033_p3 = scmp.lt.s32.totalorder %s1031_s13, %s1024_s11 }
  0x95   : > { %p1028_p2 = pneg %p1027_p9  ;;  %p1034_p10 = por %p1033_p3, %p1032_p7 }
  0x97   : > { %p1035_p12 = pnand %p1034_p10, %p1028_p2 }
  0x99   : > { %1038 = shalt.err (!%p1035_p12)
}
  0x9a   : > { %806 = dma.hbm_to_vmem [thread:$0]  (!%p1413_p13), %s1407_s28, 32, %s1402_s1, %s290_s0  }
  0x9b   : > { %p1582_p6 = scmp.ne.s32.totalorder %s1567_s10, 0 }
  0x9c   : > { %s313_s8 = sand.u32 (!%p1582_p6), 1, %s1113_s25   ;;  %p1583_p4 = scmp.ne.s32.totalorder (!%p1582_p6), %s1572_s17, 0 }
  0x9d   : > { %311 = sbr.rel (%p1582_p6) target bundleno = 1059 (0x423), region = 44  ;;  %s1445_s2 = sshll.u32 (!%p1582_p6), %s313_s8, 3 }
  0x9e   : > { %s314_s6 = scalar_lea.sflag (!%p1582_p6), [#allocation6], %s313_s8  ;;  %s317_s3 = scalar_lea.vmem (!%p1582_p6), [#allocation5], %s1445_s2 }
  0xa4   : > { %1084 = dma.done.wait (%p1583_p4), %s314_s6, 128  }
  0xa5   : > { %1086 = vsyncadd (%p1583_p4), %s314_s6, 4294967168  ;;  %p1584_p5 = scmp.ne.s32.totalorder %s1566_s9, 0 }
  0xa7   : > { %1088 = dma.done.wait (%p1584_p5), [#allocation8], 272  }
  0xa8   : > { %1090 = vsyncadd (%p1584_p5), [#allocation8], 4294967024  ;;  %s330_s1 = sand.u32 1, %s1101_s22  }
  0xa9   : > { %s1457_s28 = sshll.u32 %s330_s1, 1  ;;  %s331_s10 = scalar_lea.sflag [#allocation11], %s330_s1 }
  0xaa   : > { %1092 = dma.done.wait (%p1387_p1), %s331_s10, 32  }
  0xab   : > { %1094 = vsyncadd (%p1387_p1), %s331_s10, 4294967264  ;;  %s1585_s17 = sld [smem:[#allocation16_spill]]  ;;  %s1586_s0 = sld [smem:[#allocation15_spill]] }
  0xac   : > { %s1587_s15 = sld [smem:[#allocation20_spill]]  ;;  %s1588_s6 = sld [smem:[#allocation24_spill]] }
  0xad   : > { %s1589_s5 = sld [smem:[#allocation22_spill]] }
  0xb1   : > { %p379_p13 = scmp.lt.s32.totalorder %s1585_s17, 1  ;;  %p385_p0 = scmp.lt.s32.totalorder %s1586_s0, 3 }
  0xb2   : > { %p757_p1 = scmp.ne.s32.totalorder %s1586_s0, 0 }
  0xb3   : > { %s1614_s17 = smov (!%p379_p13, %s1585_s17), 1  ;;  %v401_v0 = vld [vmem:[#allocation7] sm:$0xff] (!%p757_p1)  ;;  %vm404_vm0 = vcmask (!%p757_p1), 261120   ;;  %v402_v1 = vld [vmem:[#allocation7 + $0x8] sm:$0xff] (!%p757_p1)  ;;  %v400_v2 = vld [vmem:[%s317_s3] sm:$0xff] (!%p757_p1)  ;;  %v1145_v9 = vmov (!%p757_p1), 0.0|0.0   ;;  %v522_v30 = vlaneseq (!%p757_p1) }
  0xb4   : > { %s386_s27 = scalar_select %p385_p0, %s1586_s0, 3 }
  0xb5   : > { %s752_s4 = sshll.u32 %s1614_s17, 3  ;;  %s753_s18 = sshll.u32 %s1614_s17, 2  ;;  %v410_v3 = vmul.f32 (!%p757_p1), %v401_v0, %v401_v0  ;;  %v411_v4 = vmul.f32 (!%p757_p1), %v402_v1, %v402_v1  ;;  %v403_v5 = vmul.f32 (!%p757_p1), %v400_v2, %v400_v2  ;;  %777 = vmatprep.subr.bf16.mxu0 (!%p757_p1), %v1145_v9  ;;  %vm1146_vm1 = vmmov (!%p757_p1), 0   ;;  %vm779_vm2 = vmpackc.low (!%p757_p1), %vm404_vm0, %vm404_vm0  ;;  %v761_v35 = vld [vmem:[#allocation9] ss:$0 sm:$0xff] (!%p757_p1) }
  0xb6   : > { %s1472_s20 = scalar_lea.vmem %s1587_s15, %s752_s4  ;;  %s388_s13 = sadd.s32 %s753_s18, %s386_s27  ;;  %v1147_v10 = vmov (!%p757_p1), 0.0   ;;  %v1148_v26 = vmov (!%p757_p1), 0   ;;  %vm505_vm3 = vcmask (!%p757_p1), 130048   ;;  %v523_v31 = vshrl.u32 (!%p757_p1), %v522_v30, 7 }
  0xb7   : > { %s754_s12 = sshll.u32 %s388_s13, 2  ;;  %s1477_s1 = scalar_lea.vmem %s1588_s6, %s752_s4  ;;  %v412_v6 = vsel (!%p757_p1), %vm404_vm0, %v410_v3, 0.0  ;;  %v405_v7 = vsel (!%p757_p1), %vm404_vm0, %v403_v5, 0.0  ;;  %v415_v8 = vsel (!%p757_p1), %vm404_vm0, %v411_v4, 0.0  ;;  %774 = vmatprep.mubr.msk.f32.mxu0 (!%p757_p1), %vm1146_vm1, %v1147_v10  ;;  %v510_v25 = vld [vmem:[%s1472_s20] sm:$0xff] (!%p757_p1)  ;;  %908 = vset.pattern.permute.xlu0 (!%p757_p1), %v1148_v26  ;;  %v527_v34 = vand.u32 (!%p757_p1), 127, %v522_v30 }
  0xb8   : > { %s1482_s9 = scalar_lea.vmem %s1589_s5, %s754_s12  ;;  %399 = sbr.rel (%p757_p1) target bundleno = 874 (0x36a), region = 64  ;;  %413 = vadd.xlane.f32.xlu0 (!%p757_p1), %v412_v6  ;;  %406 = vadd.xlane.f32.xlu1 (!%p757_p1), %v405_v7  ;;  %vm538_vm6 = vcmask (!%p757_p1), 7168  }
  0xb9   : > { %s1590_s5 = sld [smem:[#allocation16_spill]] (!%p757_p1) }
  0xbc   : > { %416 = vadd.xlane.f32.xlu0 (!%p757_p1), %v415_v8 }
  0xbf   : > { %s1591_s3 = sshll.u32 %s1590_s5, 3 }
  0xc0   : > { %v524_v32 = vstv %s1591_s3 }
  0xc1   : > { %v525_v33 = vadd.s32 %v524_v32, %v523_v31 }
  0xc3   : > { %vm528_vm4 = vcmp.ne.s32.totalorder %v525_v33, %v527_v34 }
  0xc4   : > { %v763_v37 = vsel %vm528_vm4, 1.0, %v1147_v10 }
  0xd2   : > { %513 = vperm.xlu0 %908, %v510_v25  }
 0x145   : > { %v414_v11 = vpop.xlane.xlu0 %413  ;;  %v407_v13 = vpop.xlane.xlu1 %406 }
 0x146   : > { %v418_v12 = vmax.f32 %v414_v11, 1e-16  ;;  %v408_v15 = vmax.f32 %v407_v13, 1e-16 }
 0x148   : > { %909 = vrsqrt.f32 %v418_v12 }
 0x149   : > { %v417_v14 = vpop.xlane.xlu0 %416 }
 0x14a   : > { %v419_v16 = vmax.f32 %v417_v14, 1e-16 }
 0x14c   : > { %911 = vrsqrt.f32 %v419_v16 }
 0x14d   : > { %913 = vrsqrt.f32 %v408_v15 }
 0x151   : > { %v514_v36 = vpop.permute.xlu0 %513 }
 0x152   : > { %v910_v17 = vpop.eup %909  ;;  %vm519_vm5 = vcmp.eq.s32.totalorder %v514_v36, %v761_v35 }
 0x153   : > { %v424_v20 = vmul.f32 %v910_v17, %v401_v0  ;;  %v762_v38 = vsel %vm519_vm5, 1.0, %v1147_v10 }
 0x154   : > { %v531_v39 = vmul.f32 %v763_v37, %v762_v38 }
 0x156   : > { %v912_v18 = vpop.eup %911  ;;  %v545_v48 = vsel %vm505_vm3, %v531_v39, 0.0 }
 0x157   : > { %v914_v19 = vpop.eup %913  ;;  %v425_v21 = vmul.f32 %v912_v18, %v402_v1 }
 0x158   : > { %v422_v23 = vmul.f32 14.285714, %v914_v19 }
 0x159   : > { %v778_v22 = vpack.c.bf16 %v425_v21, %v424_v20 }
 0x15a   : > { %v423_v24 = vmul.f32 %v422_v23, %v400_v2 }
 0x15b   : > { %780 = vmatpush3.bf16.xpose.msk.msra.mxu0 %vm779_vm2, %v778_v22 }
 0x162   : > { %775 = vmatmul.mubr.msk.f32.vlgmr.msra.gmra.mrb[0].mxu0 %vm404_vm0, %v423_v24 }
 0x235   : > { %v501_v27 = vpop.f32.mrb[0].mxu0 }
 0x236   : > { %v776_v28 = vpop.f32.mrb[1].mxu0  ;;  %v506_v29 = vsel %vm505_vm3, %v501_v27, -inf }
 0x237   : > { %507 = vmax.xlane.f32.xlu1 %v506_v29 }
 0x2c4   : > { %v508_v40 = vpop.xlane.xlu1 %507 }
 0x2c5   : > { %v509_v41 = vsub.f32 %v501_v27, %v508_v40 }
 0x2c7   : > { %v532_v42 = vmul.f32 1.442695, %v509_v41  ;;  %v540_v43 = vmul.f32 %v531_v39, %v509_v41 }
 0x2c9   : > { %915 = vpow2.f32 %v532_v42  ;;  %v541_v44 = vsel %vm505_vm3, %v540_v43, 0.0 }
 0x2ca   : > { %542 = vadd.xlane.f32.xlu1 %v541_v44 }
 0x2d3   : > { %v916_v45 = vpop.eup %915 }
 0x2d4   : > { %v534_v46 = vmul.f32 %v916_v45, %v763_v37 }
 0x2d6   : > { %v535_v47 = vsel %vm505_vm3, %v534_v46, 0.0 }
 0x2d7   : > { %536 = vadd.xlane.f32.xlu1 %v535_v47 }
 0x2db   : > { %546 = vadd.xlane.f32.xlu1 %v545_v48 }
 0x357   : > { %v543_v49 = vpop.xlane.xlu1 %542 }
 0x358   : > { %544 = vst.msk [vmem:[#allocation3] sm:$0xff] %vm538_vm6, %v543_v49 }
 0x364   : > { %v537_v50 = vpop.xlane.xlu1 %536 }
 0x365   : > { %539 = vst.msk [vmem:[#allocation2] sm:$0xff] %vm538_vm6, %v537_v50 }
 0x368   : > { %v547_v51 = vpop.xlane.xlu1 %546 }
 0x369   : > { %548 = vst.msk [vmem:[#allocation4] sm:$0xff] %vm538_vm6, %v547_v51 }
 0x36a PF: > { %v549_v52 = vld [vmem:[%s1482_s9] sm:$0xf]  ;;  %s1592_s16 = scalar_lea.vmem [#allocation10], %s1457_s28  ;;  %vm560_vm7 = vcmask 7168   ;;  %v562_v2 = vld [vmem:[#allocation3] sm:$0xff]  ;;  %s1593_s28 = sld [smem:[#allocation15_spill]] }
 0x36b   : > { %v551_v53 = vld [vmem:[%s1592_s16] sm:$0x3]  ;;  %v550_v54 = vunpack.c.l.bf16 %v549_v52 }
 0x36c   : > { %v552_v55 = vunpack.c.0.s8 %v551_v53  ;;  %v554_v63 = vld [vmem:[#allocation2] sm:$0xff] }
 0x36d   : > { %v555_v56 = vmul.f32 1.442695, %v550_v54 }
 0x36e   : > { %v553_v57 = vcvt.s32.f32 %v552_v55 }
 0x36f   : > { %917 = vpow2.f32 %v555_v56 }
 0x370   : > { %569 = vadd.xlane.f32.xlu1 %v553_v57  ;;  %v563_v59 = vmul.f32 %v553_v57, %v550_v54  ;;  %v568_v60 = vld [vmem:[#allocation4] sm:$0xff]  ;;  %p764_p8 = scmp.ne.s32.totalorder %s1593_s28, 3 }
 0x379   : > { %v918_v58 = vpop.eup %917 }
 0x37a   : > { %557 = vadd.xlane.f32.xlu0 %v918_v58 }
 0x37e   : > { %564 = vadd.xlane.f32.xlu0 %v563_v59 }
 0x3fd   : > { %v570_v61 = vpop.xlane.xlu1 %569 }
 0x3fe   : > { %v571_v62 = vadd.f32 %v570_v61, %v568_v60 }
 0x400   : > { %572 = vst.msk [vmem:[#allocation4] sm:$0xff] %vm560_vm7, %v571_v62 }
 0x407   : > { %v558_v0 = vpop.xlane.xlu0 %557  ;;  %v581_v6 = vld [vmem:[#allocation4] sm:$0xff] (!%p764_p8) }
 0x408   : > { %v559_v1 = vadd.f32 %v558_v0, %v554_v63  ;;  %576 = sbr.rel (%p764_p8) target bundleno = 1059 (0x423), region = 68 }
 0x40a   : > { %561 = vst.msk [vmem:[#allocation2] sm:$0xff] %vm560_vm7, %v559_v1 }
 0x40b   : > { %v565_v3 = vpop.xlane.xlu0 %564 }
 0x40c   : > { %v566_v4 = vadd.f32 %v565_v3, %v562_v2 }
 0x40e   : > { %567 = vst.msk [vmem:[#allocation3] sm:$0xff] %vm560_vm7, %v566_v4 }
 0x411   : > { %v577_v5 = vld [vmem:[#allocation2] sm:$0xff] }
 0x412   : > { %919 = vlog2.f32 %v577_v5 }
 0x413   : > { %921 = vrcp.f32 %v581_v6 }
 0x415   : > { %v580_v7 = vld [vmem:[#allocation3] sm:$0xff] }
 0x41c   : > { %v920_v8 = vpop.eup %919 }
 0x41d   : > { %v922_v9 = vpop.eup %921  ;;  %v579_v10 = vmul.f32 0.6931472, %v920_v8 }
 0x41e   : > { %v583_v11 = vmul.f32 %v922_v9, %v580_v7 }
 0x420   : > { %v584_v12 = vsub.f32 %v579_v10, %v583_v11 }
 0x422   : > { %585 = vst.msk [vmem:[%s1477_s1] sm:$0xff] %vm560_vm7, %v584_v12 }
 0x423 PF: > { %s23_s7 = sadd.s32 1, %s1137_s7   ;;  %s1594_s17 = smov %s1399_s21 }
 0x424   : > { %p20_p11 = scmp.ge.s32.totalorder %s23_s7, 10   ;;  %s1595_s0 = smov %s1396_s24 }
 0x425   : > { %s1596_s9 = sld [smem:[#allocation17_spill]]  ;;  %s1597_s21 = smov %s1101_s22 }
 0x426   : > { %s1598_s22 = smov %s1105_s23  ;;  %s1599_s23 = smov %s1594_s17 }
 0x427   : > { %s1600_s24 = smov %s1113_s25  ;;  %s1601_s25 = smov %s1117_s26 }
 0x428   : > { %s1602_s26 = smov %s1595_s0  ;;  %s1603_s27 = smov %s1129_s29 }
 0x429   : > { %s1604_s28 = smov %s1133_s30  ;;  %s1606_s30 = smov %s1612_s14 }
 0x42a   :  { %22 = sbr.rel (!%p20_p11) target bundleno = 18 (0x12), region = 119 }
 0x42b   : > { %s1605_s29 = smov %s1596_s9 }
 0x431   :  { %605 = vsyncpa [#allocation6], 1 }
 0x432   :  { %607 = vsyncpa [#allocation6 + $0x1], 1 }
 0x433   :  { %608 = vsyncpa [#allocation8], 1 }
 0x434   :  { %609 = vsyncpa [#allocation11], 1 }
 0x435   :  { %611 = vsyncpa [#allocation11 + $0x1], 1 }

</bundles_post_ra>
